<compile_context>
chip_gen: v7x
topology: tpu7x:2x2x1
jax: 0.10.0
libtpu: 0.0.40
codegen_flags: <defaults>
</compile_context>

<pallas_src>
import jax
import jax.numpy as jnp
from jax import lax
from jax.experimental import pallas as pl
from jax.experimental.pallas import tpu as pltpu

INV_SQRT2 = 0.7071067811865476


# --------------------------------------------------------------------------
# Kernels
# --------------------------------------------------------------------------
def _gelu_exact(h):
    # torch nn.GELU() default: 0.5 * h * (1 + erf(h / sqrt(2)))  (f32 math).
    return 0.5 * h * (1.0 + lax.erf(h * INV_SQRT2))


def _mlp_kernel_resident(x_ref, w1_ref, b1_ref, w2_ref, b2_ref, o_ref):
    # Whole hidden dim resident in VMEM: no accumulator scratch, one store.
    # x_ref: (tm, C)  w1_ref: (C, H)  b1_ref: (1, H)  w2_ref: (H, C)
    # b2_ref: (1, C)  o_ref: (tm, C)
    x = x_ref[...].astype(w1_ref.dtype)          # per-tile cast (VMEM only)
    h = jnp.dot(x, w1_ref[...], preferred_element_type=jnp.float32)
    h = _gelu_exact(h + b1_ref[...].astype(jnp.float32))
    out = jnp.dot(h.astype(w2_ref.dtype), w2_ref[...],
                  preferred_element_type=jnp.float32)
    o_ref[...] = (out + b2_ref[...].astype(jnp.float32)).astype(o_ref.dtype)


def _mlp_kernel_streamed(x_ref, w1_ref, b1_ref, w2_ref, b2_ref, o_ref, acc_ref):
    # Hidden dim streamed in (C, th)/(th, C) slabs; acc_ref (tm, C) f32 is
    # resident across the H ("arbitrary", last) grid axis.
    h_idx = pl.program_id(1)
    x = x_ref[...].astype(w1_ref.dtype)
    h = jnp.dot(x, w1_ref[...], preferred_element_type=jnp.float32)
    h = _gelu_exact(h + b1_ref[...].astype(jnp.float32))
    part = jnp.dot(h.astype(w2_ref.dtype), w2_ref[...],
                   preferred_element_type=jnp.float32)

    @pl.when(h_idx == 0)
    def _first():
        acc_ref[...] = part                      # assign: no zero-init pass

    @pl.when(h_idx > 0)
    def _accum():
        acc_ref[...] += part

    @pl.when(h_idx == pl.num_programs(1) - 1)
    def _finalize():
        o_ref[...] = (acc_ref[...] + b2_ref[...].astype(jnp.float32)
                      ).astype(o_ref.dtype)


# --------------------------------------------------------------------------
# Tiling / VMEM heuristics
# --------------------------------------------------------------------------
def _round_up(x, m):
    return (x + m - 1) // m * m


def _default_vmem_limit():
    try:
        cap = int(pltpu.get_tpu_info().vmem_capacity_bytes)
    except Exception:
        cap = 64 * 1024 * 1024            # conservative (v7x per-TC VMEM)
    # ~80% of physical, capped: ~102 MiB on 128 MiB chips, ~51 MiB on v7x.
    return min(int(cap * 0.8), 112 * 1024 * 1024)


def _vmem_need(tm, C, H, th, w_isz, x_isz, o_isz, weight_buffers=2):
    """Rough per-call VMEM footprint (bytes) including f32 intermediates."""
    nh = H // th
    wbuf = 1 if nh == 1 else weight_buffers           # Buffered(1) when constant
    w = wbuf * (C * th + th + th * C) * w_isz + 2 * C * 4
    act = 2 * tm * C * (x_isz + o_isz)                # double-buffered x / out
    inter = tm * th * 4                               # f32 h intermediate
    if nh > 1:
        inter += tm * C * 4                           # f32 accumulator scratch
    return w + act + inter


def _auto_th(C, H, tm, w_isz, x_isz, o_isz, budget, weight_buffers=2):
    """Keep weights fully resident if they fit; else pick a streaming tile."""
    if _vmem_need(tm, C, H, H, w_isz, x_isz, o_isz, weight_buffers) <= budget:
        return H
    for align in (256, 128):              # 256-align preferred (v6e/v7x 2x256 MXU)
        if H % align:
            continue
        t = H - align
        while t >= align:
            if H % t == 0 and _vmem_need(tm, C, H, t, w_isz, x_isz, o_isz,
                                         weight_buffers) <= budget:
                return t
            t -= align
    return 128 if H % 128 == 0 else H


def _choose_tm(M, tm_req):
    """Pick a row tile: prefer one that divides M (no pad round-trip); keep
    >= 2 tiles for non-tiny M so both v7x TensorCores get work."""
    tm_req = max(8, _round_up(int(tm_req), 8))
    if M >= 512:
        tm_req = min(tm_req, _round_up(M // 2, 8))
    if M % 8 == 0 and M >= 8:
        start = (min(tm_req, M) // 8) * 8
        for cand in range(start, 7, -8):
            if M % cand == 0:
                if 2 * cand >= min(tm_req, M):       # close enough to request
                    return cand, M                   # exact division: no pad
                break
    tm_eff = min(tm_req, _round_up(M, 8))
    return tm_eff, _round_up(M, tm_eff)


# --------------------------------------------------------------------------
# Wrapper
# --------------------------------------------------------------------------
def mlp_pallas(x, w1, b1, w2, b2, *, tm=256, th=None,
               compute_dtype=jnp.bfloat16, vmem_limit_bytes=None,
               weight_buffers=2):
    """GPT-2 MLP forward.  x: (B, T, C); w1: (C, H); b1: (H,); w2: (H, C);
    b2: (C,) with H = 4*C.

    compute_dtype: MXU operand dtype (bf16 default; f32 accumulation kept).
        Weights are cast once here; activations are cast per-tile in-kernel.
    th: hidden-dim tile. None => auto (fully resident whenever VMEM allows,
        256-aligned streaming slabs otherwise).
    weight_buffers: pipeline depth for streamed W1/W2 (3 recommended on v5e).
    """
    B, T, C = x.shape
    H = w1.shape[1]
    out_dtype = x.dtype
    M = B * T

    # Weight cast is a one-off, small relative to activations; the activation
    # tensor itself is NOT cast here (done per-tile inside the kernel).
    if compute_dtype is not None:
        if w1.dtype != compute_dtype:
            w1 = w1.astype(compute_dtype)
        if w2.dtype != compute_dtype:
            w2 = w2.astype(compute_dtype)

    if vmem_limit_bytes is None:
        vmem_limit_bytes = _default_vmem_limit()
    budget = int(vmem_limit_bytes * 0.85)

    w_isz = jnp.dtype(w1.dtype).itemsize
    x_isz = jnp.dtype(x.dtype).itemsize
    o_isz = jnp.dtype(out_dtype).itemsize

    # --- Row (M) tiling ---
    tm_eff, M_pad = _choose_tm(M, tm)

    # --- Hidden (H) policy: resident unless VMEM forces streaming ---
    if th is None:
        th = _auto_th(C, H, tm_eff, w_isz, x_isz, o_isz, budget, weight_buffers)
    assert H % th == 0, "hidden tile must divide H"
    assert th == H or th % 128 == 0, "hidden tile must be lane-aligned (x128)"
    nh = H // th

    if nh > 1:
        # Streaming re-reads W1/W2 once per M tile: larger row tiles cut that
        # traffic ~linearly, so bump tm toward 512 if VMEM still allows.
        tm_big, M_pad_big = _choose_tm(M, max(tm, 512))
        if (tm_big > tm_eff and
                _vmem_need(tm_big, C, H, th, w_isz, x_isz, o_isz,
                           weight_buffers) <= budget):
            tm_eff, M_pad = tm_big, M_pad_big

    x2d = x.reshape(M, C)
    if M_pad != M:
        x2d = jnp.pad(x2d, ((0, M_pad - M), (0, 0)))   # padded rows sliced off

    b1_2d = b1.reshape(1, H)
    b2_2d = b2.reshape(1, C)

    def const_spec(shape, index_map):
        # Constant-index blocks only need ONE VMEM buffer.
        return pl.BlockSpec(shape, index_map, pipeline_mode=pl.Buffered(1))

    num_m_tiles = M_pad // tm_eff

    if nh == 1:
        grid = (num_m_tiles,)
        in_specs = [
            pl.BlockSpec((tm_eff, C), lambda i: (i, 0)),       # x rows
            const_spec((C, H), lambda i: (0, 0)),              # W1 (resident)
            const_spec((1, H), lambda i: (0, 0)),              # b1
            const_spec((H, C), lambda i: (0, 0)),              # W2 (resident)
            const_spec((1, C), lambda i: (0, 0)),              # b2
        ]
        out_spec = pl.BlockSpec((tm_eff, C), lambda i: (i, 0))
        scratch = []
        kernel = _mlp_kernel_resident
        dims = ("parallel",)
    else:
        def w_spec(shape, index_map):
            if weight_buffers == 2:                            # default depth
                return pl.BlockSpec(shape, index_map)
            return pl.BlockSpec(shape, index_map,
                                pipeline_mode=pl.Buffered(weight_buffers))
        grid = (num_m_tiles, nh)
        in_specs = [
            pl.BlockSpec((tm_eff, C), lambda i, h: (i, 0)),    # x rows
            w_spec((C, th), lambda i, h: (0, h)),              # W1 slab
            w_spec((1, th), lambda i, h: (0, h)),              # b1 slab
            w_spec((th, C), lambda i, h: (h, 0)),              # W2 slab
            const_spec((1, C), lambda i, h: (0, 0)),           # b2 (constant)
        ]
        out_spec = pl.BlockSpec((tm_eff, C), lambda i, h: (i, 0))
        scratch = [pltpu.VMEM((tm_eff, C), jnp.float32)]
        kernel = _mlp_kernel_streamed
        dims = ("parallel", "arbitrary")

    # Cost estimate reflecting real HBM traffic (weights re-streamed per M
    # tile when nh > 1).
    w_passes = 1 if nh == 1 else num_m_tiles
    bytes_accessed = (
        M_pad * C * x_isz
        + w_passes * ((C * H + H) * w_isz + H * C * w_isz)
        + C * 4
        + M_pad * C * o_isz
    )
    cost = pl.CostEstimate(
        flops=4 * M_pad * C * H,          # two (M, C, H) matmuls
        transcendentals=M_pad * H,        # erf
        bytes_accessed=int(bytes_accessed),
    )

    out2d = pl.pallas_call(
        kernel,
        out_shape=jax.ShapeDtypeStruct((M_pad, C), out_dtype),
        grid_spec=pltpu.PrefetchScalarGridSpec(
            num_scalar_prefetch=0,
            grid=grid,
            in_specs=in_specs,
            out_specs=out_spec,
            scratch_shapes=scratch,
        ),
        compiler_params=pltpu.CompilerParams(
            dimension_semantics=dims,
            vmem_limit_bytes=int(vmem_limit_bytes),
        ),
        cost_estimate=cost,
    )(x2d, w1, b1_2d, w2, b2_2d)

    return out2d[:M].reshape(B, T, C)


# --------------------------------------------------------------------------
# Reference + test harness
# --------------------------------------------------------------------------
def mlp_reference(x, w1, b1, w2, b2):
    h = jnp.einsum("btc,ch->bth", x, w1,
                   preferred_element_type=jnp.float32) + b1
    h = 0.5 * h * (1.0 + lax.erf(h * INV_SQRT2))
    out = jnp.einsum("bth,hc->btc", h, w2,
                     preferred_element_type=jnp.float32) + b2
    return out.astype(x.dtype)


def _make_params(key, C, H):
    # PyTorch nn.Linear-style init: uniform(-1/sqrt(fan_in), 1/sqrt(fan_in)).
    # Weights stored pre-transposed as (in, out) so the kernel does x @ W.
    k1, k2, k3, k4 = jax.random.split(key, 4)
    bound1 = 1.0 / (C ** 0.5)
    w1 = jax.random.uniform(k1, (C, H), minval=-bound1, maxval=bound1,
                            dtype=jnp.float32)
    b1 = jax.random.uniform(k2, (H,), minval=-bound1, maxval=bound1,
                            dtype=jnp.float32)
    bound2 = 1.0 / (H ** 0.5)
    w2 = jax.random.uniform(k3, (H, C), minval=-bound2, maxval=bound2,
                            dtype=jnp.float32)
    b2 = jax.random.uniform(k4, (C,), minval=-bound2, maxval=bound2,
                            dtype=jnp.float32)
    return w1, b1, w2, b2


if __name__ == "__main__":
    key = jax.random.PRNGKey(0)
    kx1, kp1, kx2, kp2 = jax.random.split(key, 4)

    # ---- Config A: n_embd=32 -> hidden=128, M=16 (divides exactly, no pad)
    B, T, C = 2, 8, 32
    H = 4 * C
    x = jax.random.normal(kx1, (B, T, C), dtype=jnp.float32)
    w1, b1, w2, b2 = _make_params(kp1, C, H)
    ref = mlp_reference(x, w1, b1, w2, b2)

    # Test 1: default path (bf16 MXU operands, f32 accumulation, resident W).
    out_bf16 = jax.block_until_ready(mlp_pallas(x, w1, b1, w2, b2))
    assert out_bf16.shape == (B, T, C)
    assert jnp.allclose(out_bf16, ref, atol=5e-2, rtol=5e-2), "bf16 mismatch"

    # Test 2: f32 operand path, resident weights, tight tolerance.
    out_f32 = jax.block_until_ready(
        mlp_pallas(x, w1, b1, w2, b2, compute_dtype=jnp.float32))
    assert jnp.allclose(out_f32, ref, atol=1e-5, rtol=1e-5), "f32 mismatch"

    # Test 3: H-streaming path (nh=2) + ragged M=15 (padding fallback), f32.
    B2, T2, C2 = 3, 5, 64          # M = 15 (not a multiple of 8) -> padded
    H2 = 4 * C2                    # 256, streamed as two 128-wide H tiles
    x2 = jax.random.normal(kx2, (B2, T2, C2), dtype=jnp.float32)
    w1b, b1b, w2b, b2b = _make_params(kp2, C2, H2)
    out2 = jax.block_until_ready(
        mlp_pallas(x2, w1b, b1b, w2b, b2b, th=128, compute_dtype=jnp.float32))
    ref2 = mlp_reference(x2, w1b, b1b, w2b, b2b)
    assert out2.shape == (B2, T2, C2)
    assert jnp.allclose(out2, ref2, atol=1e-4, rtol=1e-4), "streamed mismatch"

    print("KERNEL_OK")
</pallas_src>

<mosaic_0001>
module attributes {stable_mosaic.version = 11 : i64} {
  func.func @_mlp_kernel_resident(%arg0: i32, %arg1: memref<16x32xf32, #tpu.memory_space<vmem>>, %arg2: memref<32x128xbf16, #tpu.memory_space<vmem>>, %arg3: memref<1x128xf32, #tpu.memory_space<vmem>>, %arg4: memref<128x32xbf16, #tpu.memory_space<vmem>>, %arg5: memref<1x32xf32, #tpu.memory_space<vmem>>, %arg6: memref<16x32xf32, #tpu.memory_space<vmem>>) attributes {dimension_semantics = [#tpu.dimension_semantics<parallel>], iteration_bounds = array<i64: 1>, scalar_prefetch = 0 : i64, scratch_operands = 0 : i64, tpu.core_type = #tpu.core_type<tc>, window_params = [{transform_indices = @transform_0, window_bounds = array<i64: 16, 32>}, {pipeline_mode = #tpu.pipeline_mode<synchronous>, transform_indices = @transform_1, window_bounds = array<i64: 32, 128>}, {pipeline_mode = #tpu.pipeline_mode<synchronous>, transform_indices = @transform_2, window_bounds = array<i64: 1, 128>}, {pipeline_mode = #tpu.pipeline_mode<synchronous>, transform_indices = @transform_3, window_bounds = array<i64: 128, 32>}, {pipeline_mode = #tpu.pipeline_mode<synchronous>, transform_indices = @transform_4, window_bounds = array<i64: 1, 32>}, {transform_indices = @transform_5, window_bounds = array<i64: 16, 32>}]} {
    %c0 = arith.constant 0 : index
    %c0_0 = arith.constant 0 : index
    %0 = vector.load %arg1[%c0, %c0_0] : memref<16x32xf32, #tpu.memory_space<vmem>>, vector<16x32xf32>
    %1 = arith.truncf %0 : vector<16x32xf32> to vector<16x32xbf16>
    %c0_1 = arith.constant 0 : index
    %c0_2 = arith.constant 0 : index
    %2 = vector.load %arg2[%c0_1, %c0_2] : memref<32x128xbf16, #tpu.memory_space<vmem>>, vector<32x128xbf16>
    %cst = arith.constant dense<0.000000e+00> : vector<16x128xf32>
    %3 = tpu.matmul %1, %2, %cst {dimension_numbers = #tpu.dot_dimension_numbers<[1], [0], [0], [1], [0, 0, 1, 1], [], []>} : vector<16x32xbf16>, vector<32x128xbf16>, vector<16x128xf32> -> vector<16x128xf32>
    %c0_3 = arith.constant 0 : index
    %c0_4 = arith.constant 0 : index
    %4 = vector.load %arg3[%c0_3, %c0_4] : memref<1x128xf32, #tpu.memory_space<vmem>>, vector<1x128xf32>
    %5 = vector.broadcast %4 : vector<1x128xf32> to vector<16x128xf32>
    %6 = arith.addf %3, %5 : vector<16x128xf32>
    %cst_5 = arith.constant 5.000000e-01 : f32
    %7 = vector.broadcast %cst_5 : f32 to vector<16x128xf32>
    %8 = arith.mulf %7, %6 : vector<16x128xf32>
    %cst_6 = arith.constant 0.707106769 : f32
    %9 = vector.broadcast %cst_6 : f32 to vector<16x128xf32>
    %10 = arith.mulf %6, %9 : vector<16x128xf32>
    %11 = math.erf %10 : vector<16x128xf32>
    %cst_7 = arith.constant 1.000000e+00 : f32
    %12 = vector.broadcast %cst_7 : f32 to vector<16x128xf32>
    %13 = arith.addf %12, %11 : vector<16x128xf32>
    %14 = arith.mulf %8, %13 : vector<16x128xf32>
    %15 = arith.truncf %14 : vector<16x128xf32> to vector<16x128xbf16>
    %c0_8 = arith.constant 0 : index
    %c0_9 = arith.constant 0 : index
    %16 = vector.load %arg4[%c0_8, %c0_9] : memref<128x32xbf16, #tpu.memory_space<vmem>>, vector<128x32xbf16>
    %cst_10 = arith.constant dense<0.000000e+00> : vector<16x32xf32>
    %17 = tpu.matmul %15, %16, %cst_10 {dimension_numbers = #tpu.dot_dimension_numbers<[1], [0], [0], [1], [0, 0, 1, 1], [], []>} : vector<16x128xbf16>, vector<128x32xbf16>, vector<16x32xf32> -> vector<16x32xf32>
    %c0_11 = arith.constant 0 : index
    %c0_12 = arith.constant 0 : index
    %18 = vector.load %arg5[%c0_11, %c0_12] : memref<1x32xf32, #tpu.memory_space<vmem>>, vector<1x32xf32>
    %19 = vector.broadcast %18 : vector<1x32xf32> to vector<16x32xf32>
    %20 = arith.addf %17, %19 : vector<16x32xf32>
    %c0_13 = arith.constant 0 : index
    %c0_14 = arith.constant 0 : index
    %21 = vector.load %arg6[%c0_13, %c0_14] : memref<16x32xf32, #tpu.memory_space<vmem>>, vector<16x32xf32>
    tpu.vector_store %arg6[%c0_13, %c0_14], %20 {strides = array<i32>} : memref<16x32xf32, #tpu.memory_space<vmem>>, vector<16x32xf32>,
    return
  }
  func.func @transform_0(%arg0: i32) -> (i32, i32) {
    %c0_i32 = arith.constant 0 : i32
    %c0_i32_0 = arith.constant 0 : i32
    return %arg0, %c0_i32 : i32, i32
  }
  func.func @transform_1(%arg0: i32) -> (i32, i32) {
    %c0_i32 = arith.constant 0 : i32
    %c0_i32_0 = arith.constant 0 : i32
    %c0_i32_1 = arith.constant 0 : i32
    return %c0_i32, %c0_i32_0 : i32, i32
  }
  func.func @transform_2(%arg0: i32) -> (i32, i32) {
    %c0_i32 = arith.constant 0 : i32
    %c0_i32_0 = arith.constant 0 : i32
    %c0_i32_1 = arith.constant 0 : i32
    return %c0_i32, %c0_i32_0 : i32, i32
  }
  func.func @transform_3(%arg0: i32) -> (i32, i32) {
    %c0_i32 = arith.constant 0 : i32
    %c0_i32_0 = arith.constant 0 : i32
    %c0_i32_1 = arith.constant 0 : i32
    return %c0_i32, %c0_i32_0 : i32, i32
  }
  func.func @transform_4(%arg0: i32) -> (i32, i32) {
    %c0_i32 = arith.constant 0 : i32
    %c0_i32_0 = arith.constant 0 : i32
    %c0_i32_1 = arith.constant 0 : i32
    return %c0_i32, %c0_i32_0 : i32, i32
  }
  func.func @transform_5(%arg0: i32) -> (i32, i32) {
    %c0_i32 = arith.constant 0 : i32
    %c0_i32_0 = arith.constant 0 : i32
    return %arg0, %c0_i32 : i32, i32
  }
}

</mosaic_0001>

<bundles_post_ra>
// kernel: tpu_custom_call.1
= control target key start
LH: loop header
LB: loop body
LE: loop exit
PB: predicated region body
PF: predicated region fallthrough
CT: control target
= control target key end

     0   :  { %v330_v1 = vmov 0.0   ;;  %vm331_vm0 = vmmov 0   ;;  %vm48_vm1 = vcmask 261120   ;;  %s422_s0 = inlined_call_operand.vmem [shape: f32[16,32], index: 0, kind: input, shape index: {}]   ;;  %s423_s1 = inlined_call_operand.vmem [shape: bf16[32,128], index: 1, kind: input, shape index: {}]   ;;  %s424_s2 = inlined_call_operand.vmem [shape: f32[1,128], index: 2, kind: input, shape index: {}]   ;;  %s425_s3 = inlined_call_operand.vmem [shape: bf16[128,32], index: 3, kind: input, shape index: {}]   ;;  %s426_s4 = inlined_call_operand.vmem [shape: f32[1,32], index: 4, kind: input, shape index: {}]   ;;  %s427_s5 = inlined_call_operand.hbm [shape: f32[16,32], index: 5, kind: output, shape index: {}]  }
   0x1   :  { %v292_v0 = vld [vmem:[%s423_s1] sm:$0xff]   ;;  %259 = vmatprep.subr.bf16.mxu0 %v330_v1  ;;  %v293_v2 = vld [vmem:[%s423_s1 + $0x8] sm:$0xff]   ;;  %267 = vmatprep.subr.bf16.mxu1 %v330_v1 }
   0x2   :  { %260 = vmatpush3.bf16.msra.mxu0 %v292_v0  ;;  %263 = vmatprep.mubr.msk.bf16.mxu0 %vm331_vm0, %v330_v1  ;;  %v22_v3 = vld [vmem:[%s422_s0] sm:$0xff]  ;;  %v23_v4 = vld [vmem:[%s422_s0 + $0x8] sm:$0xff] }
   0x3   :  { %261 = vmatprep.subr.bf16.mxu0 %v330_v1  ;;  %v294_v5 = vld [vmem:[%s425_s3] sm:$0xff]   ;;  %283 = vmatprep.mubr.msk.bf16.mxu1 %vm331_vm0, %v330_v1  ;;  %v295_v6 = vld [vmem:[%s425_s3 + $0x8] sm:$0xff]   ;;  %v24_v7 = vpack.c.bf16 %v23_v4, %v22_v3 }
   0x4   :  { %268 = vmatpush3.bf16.msra.mxu1 %v294_v5 }
   0x5   :  { %269 = vmatprep.subr.bf16.mxu1 %v330_v1 }
   0x6   :  { %262 = vmatpush3.bf16.msra.mxu0 %v293_v2 }
   0x8   :  { %270 = vmatpush3.bf16.msra.mxu1 %v295_v6 }
   0x9   :  { %264 = vmatmul.mubr.msk.bf16.vlgmr.msra.gmra.mrb[0].mxu0 %vm48_vm1, %v24_v7 }
   0xa   :  { %10 = vsyncpa [#allocation3], 0  ;;  %271 = vmatprep.subr.bf16.mxu1 %v330_v1  ;;  %v296_v8 = vld [vmem:[%s425_s3 + $0x10] sm:$0xff]   ;;  %v297_v9 = vld [vmem:[%s425_s3 + $0x18] sm:$0xff]   ;;  %s332_s17 = smov [#allocation2]  }
   0xb   :  { %v298_v10 = vld [vmem:[%s425_s3 + $0x20] sm:$0xff]   ;;  %v299_v11 = vld [vmem:[%s425_s3 + $0x28] sm:$0xff]   ;;  %v300_v12 = vld [vmem:[%s425_s3 + $0x30] sm:$0xff]   ;;  %s223_s18 = sshll.u32 %s332_s17, 4  ;;  %s224_s18 = int_to_ptr.vmem [resolvable:$true] %s223_s18 }
   0xc   :  { %272 = vmatpush3.bf16.msra.mxu1 %v296_v8  ;;  %v301_v13 = vld [vmem:[%s425_s3 + $0x38] sm:$0xff]   ;;  %v234_v14 = vld [vmem:[%s424_s2] ss:$0 sm:$0xff]  ;;  %s306_s19 = scalar_lea.vmem %s224_s18, 256  ;;  %p311_p1 = scmp.lt.s32.totalorder %s224_s18, %s224_s18 }
   0xd   :  { %273 = vmatprep.subr.bf16.mxu1 %v330_v1  ;;  %v238_v32 = vld [vmem:[%s426_s4] ss:$0 sm:$0xff]  ;;  %p307_p0 = scmp.ne.s32.totalorder %s224_s18, %s306_s19  ;;  %p312_p2 = scmp.lt.s32.totalorder %s306_s19, %s306_s19 }
   0xf   :  { %p313_p3 = por %p312_p2, %p311_p1 }
  0x10   :  { %274 = vmatpush3.bf16.msra.mxu1 %v297_v9 }
  0x11   :  { %275 = vmatprep.subr.bf16.mxu1 %v330_v1  ;;  %p314_p4 = pnand %p313_p3, %p307_p0 }
  0x14   :  { %276 = vmatpush3.bf16.msra.mxu1 %v298_v10 }
  0x15   :  { %277 = vmatprep.subr.bf16.mxu1 %v330_v1 }
  0x18   :  { %278 = vmatpush3.bf16.msra.mxu1 %v299_v11 }
  0x19   :  { %279 = vmatprep.subr.bf16.mxu1 %v330_v1 }
  0x1c   :  { %280 = vmatpush3.bf16.msra.mxu1 %v300_v12 }
  0x1d   :  { %281 = vmatprep.subr.bf16.mxu1 %v330_v1 }
  0x20   :  { %282 = vmatpush3.bf16.msra.mxu1 %v301_v13 }
  0xdc   :  { %v86_v15 = vpop.f32.mrb[0].mxu0 }
  0xdd   :  { %v87_v16 = vadd.f32 %v234_v14, %v86_v15  ;;  %v265_v17 = vpop.f32.mrb[1].mxu0 }
  0xde   :  { %v89_v18 = vpop.f32.mrb[2].mxu0 }
  0xdf   :  { %v95_v19 = vmul.f32 0.70710677, %v87_v16  ;;  %v90_v20 = vadd.f32 %v234_v14, %v89_v18  ;;  %v266_v21 = vpop.f32.mrb[3].mxu0  ;;  %v93_v26 = vmul.f32 0.5, %v87_v16 }
  0xe1   :  { %302 = verf.f32 %v95_v19  ;;  %v96_v22 = vmul.f32 0.70710677, %v90_v20  ;;  %v94_v27 = vmul.f32 0.5, %v90_v20 }
  0xe3   :  { %304 = verf.f32 %v96_v22 }
  0xeb   :  { %v303_v23 = vpop.eup %302 }
  0xec   :  { %v99_v24 = vadd.f32 1.0, %v303_v23 }
  0xed   :  { %v305_v25 = vpop.eup %304 }
  0xee   :  { %v100_v28 = vadd.f32 1.0, %v305_v25  ;;  %v101_v29 = vmul.f32 %v99_v24, %v93_v26 }
  0xf0   :  { %v102_v30 = vmul.f32 %v100_v28, %v94_v27 }
  0xf2   :  { %v103_v31 = vpack.c.bf16 %v102_v30, %v101_v29 }
  0xf4   :  { %284 = vmatmul.mubr.bf16.vlgmr.msra.gmra.mrb[0].mxu1 %v103_v31 }
 0x1c7   :  { %v209_v33 = vpop.f32.mrb[0].mxu1 }
 0x1c8   :  { %v210_v34 = vadd.f32 %v238_v32, %v209_v33  ;;  %v285_v35 = vpop.f32.mrb[1].mxu1 }
 0x1c9   :  { %v212_v36 = vpop.f32.mrb[2].mxu1 }
 0x1ca   :  { %216 = vst.msk [vmem:[#allocation2] sm:$0xff] %vm48_vm1, %v210_v34  ;;  %v213_v37 = vadd.f32 %v238_v32, %v212_v36  ;;  %v286_v38 = vpop.f32.mrb[3].mxu1 }
 0x1cc   :  { %217 = vst.msk [vmem:[#allocation2 + $0x8] sm:$0xff] %vm48_vm1, %v213_v37 }
 0x1cd   :  { %317 = shalt.err (!%p314_p4)
}
 0x1ce   :  { %s318_s21 = scalar_lea.hbm %s427_s5, 256 }
 0x1cf   :  { %p319_p5 = scmp.ne.s32.totalorder %s427_s5, %s318_s21  ;;  %p322_p6 = scmp.lt.u32.totalorder %s318_s21, %s427_s5 }
 0x1d1   :  { %p324_p7 = pnand %p322_p6, %p319_p5 }
 0x1d3   :  { %327 = shalt.err (!%p324_p7)
}
 0x1d4   :  { %s333_s26 = smov 128   ;;  %s334_s27 = smov 8  }
 0x1d5   :  { %229 = dma.vmem_to_hbm [thread:$0]  %s224_s18, 256, %s427_s5, [#allocation3], %s333_s26, %s333_s26, %s334_s27  }
 0x1d6   :  { %328 = dma.done.wait [#allocation3], 256  }
 0x1d7   :  { %329 = vsyncadd [#allocation3], 4294967040 }
 0x1d8   :  { %233 = vsyncpa [#allocation3], 1 }

</bundles_post_ra>
